<compile_context>
chip_gen: v7x
topology: tpu7x:2x2x1
jax: 0.10.0
libtpu: 0.0.40
codegen_flags: <defaults>
</compile_context>

<pallas_src>
import jax
import jax.numpy as jnp
from jax import lax
from jax.experimental import pallas as pl
from jax.experimental.pallas import tpu as pltpu

_LANES = 128
_TM_MAX = 8192   # 2 inputs x 2 bufs x 8192x128x4B = 16 MiB f32 (8 MiB bf16)

# Fixed output-row assignment for the (up to) six statistics.
_ROW_ORDER = ("cnt", "s_t", "s_p", "s_d2", "s_ad", "s_t2")
_ROW = {name: i for i, name in enumerate(_ROW_ORDER)}

# Statistics each loss actually needs (kernel is specialized on this).
_LOSS_STATS = {
    "MSE": ("cnt", "s_d2"),
    "RMSE": ("cnt", "s_d2"),
    "RMSE_normalize": ("cnt", "s_t", "s_d2"),
    "MAE": ("cnt", "s_ad"),
    "NSE_complement": ("cnt", "s_t", "s_p", "s_d2", "s_t2"),
}


def _round_up(x: int, m: int) -> int:
    return ((x + m - 1) // m) * m


def _num_tensorcores() -> int:
    # Use the 2-way core split only on multi-TensorCore chips (v7x); on
    # v5e/v6e it is pure overhead (halved tiles, extra writeback).
    # TODO(synk): verify on v7x that a plain "parallel" size-2 leading axis is
    # really sharded across both TensorCores; if not, switch that axis to
    # pltpu.CORE_PARALLEL.
    try:
        kind = jax.devices()[0].device_kind.lower()
    except Exception:
        return 1
    return 2 if ("v7" in kind or "7x" in kind) else 1


# ----------------------------------------------------------------------------
# Kernel builder: masked-reduction statistics, specialized on the stat set.
# Output slab (cores, 8, 128); after summing over cores and lanes in the
# wrapper, row k holds (0: count, 1: sum(y_t), 2: sum(y_p), 3: sum((y_t-y_p)^2),
# 4: sum(|y_t-y_p|), 5: sum(y_t^2)); unused / padding rows are zero.
# ----------------------------------------------------------------------------
def _build_kernel(stats, tm, rows, need_bounds):
    def kernel(yt_ref, yp_ref, out_ref, *acc_refs):
        c = pl.program_id(0)
        j = pl.program_id(1)
        steps = pl.num_programs(1)

        @pl.when(j == 0)
        def _():
            for acc in acc_refs:
                acc[...] = jnp.zeros_like(acc)

        yt = yt_ref[...].astype(jnp.float32)
        yp = yp_ref[...].astype(jnp.float32)

        mask = jnp.logical_not(jnp.isnan(yt))
        if need_bounds:
            # Ragged last block and clamped (duplicated) blocks: rows whose
            # global index >= rows contribute nothing.  `blk` is the
            # *unclamped* block index, so duplicated blocks mask out entirely.
            blk = c * steps + j
            row_ids = lax.broadcasted_iota(jnp.int32, yt.shape, 0)
            mask = jnp.logical_and(mask, row_ids < rows - blk * tm)

        yt0 = jnp.where(mask, yt, 0.0)
        yp0 = jnp.where(mask, yp, 0.0)
        diff = yt0 - yp0

        def tile(name):
            if name == "cnt":
                return mask.astype(jnp.float32)
            if name == "s_t":
                return yt0
            if name == "s_p":
                return yp0
            if name == "s_d2":
                return diff * diff
            if name == "s_ad":
                return jnp.abs(diff)
            if name == "s_t2":
                return yt0 * yt0
            raise KeyError(name)

        # Whole-vreg adds only: (tm,128) -> (tm/8, 8, 128) summed over the
        # leading axis into an (8,128) per-stat accumulator.
        for name, acc in zip(stats, acc_refs):
            acc[...] += jnp.sum(tile(name).reshape(-1, 8, _LANES), axis=0)

        @pl.when(j == steps - 1)
        def _():
            out_rows = []
            for row_name in _ROW_ORDER:
                if row_name in stats:
                    a = acc_refs[stats.index(row_name)]
                    out_rows.append(jnp.sum(a[...], axis=0, keepdims=True))
                else:
                    out_rows.append(jnp.zeros((1, _LANES), jnp.float32))
            out_rows.append(jnp.zeros((2, _LANES), jnp.float32))  # pad to 8
            out_ref[...] = jnp.concatenate(out_rows, axis=0)[None]

    return kernel


def _pick_tm(rows: int, cores: int) -> int:
    rows_f8 = max(8, (rows // 8) * 8)
    return min(_TM_MAX, max(8, min(_round_up(pl.cdiv(rows, cores), 8), rows_f8)))


def _masked_stats_impl(y_true, y_pred, stats):
    assert y_true.shape == y_pred.shape
    yt = jnp.ravel(y_true)
    yp = jnp.ravel(y_pred)
    total = yt.shape[0]

    rem = total % _LANES
    if rem:
        # TODO(synk): this minimal pad (to the next multiple of 128) is still a
        # full read+write copy of both arrays; a zero-copy path needs
        # memory_space=pl.ANY + manual DMA of the ragged flat tail.
        pad = _LANES - rem
        yt = jnp.pad(yt, (0, pad), constant_values=jnp.nan)  # NaN -> masked out
        yp = jnp.pad(yp, (0, pad))
    rows = yt.shape[0] // _LANES
    yt2 = yt.reshape(rows, _LANES)
    yp2 = yp.reshape(rows, _LANES)

    if rows < 8:  # tiny inputs: pad to one full (8,128) tile (negligible)
        yt2 = jnp.pad(yt2, ((0, 8 - rows), (0, 0)), constant_values=jnp.nan)
        yp2 = jnp.pad(yp2, ((0, 8 - rows), (0, 0)))
        rows = 8

    cores = _num_tensorcores()
    tm = _pick_tm(rows, cores)
    if cores > 1 and (cores - 1) * tm >= rows:
        cores = 1                     # not enough rows to feed a second core
        tm = _pick_tm(rows, cores)

    steps = pl.cdiv(rows, cores * tm)
    n_blocks = pl.cdiv(rows, tm)
    need_bounds = (cores * steps * tm) != rows

    kernel = _build_kernel(stats=stats, tm=tm, rows=rows, need_bounds=need_bounds)

    def in_map(c, j):
        blk = c * steps + j
        # Clamp so the DMA never starts fully out of bounds; clamped
        # (duplicated) blocks are masked to zero inside the kernel.
        return (jnp.minimum(blk, n_blocks - 1), 0)

    out = pl.pallas_call(
        kernel,
        out_shape=jax.ShapeDtypeStruct((cores, 8, _LANES), jnp.float32),
        grid_spec=pltpu.PrefetchScalarGridSpec(
            num_scalar_prefetch=0,
            grid=(cores, steps),
            in_specs=[
                pl.BlockSpec((tm, _LANES), in_map),
                pl.BlockSpec((tm, _LANES), in_map),
            ],
            out_specs=pl.BlockSpec((1, 8, _LANES), lambda c, j: (c, 0, 0)),
            scratch_shapes=[pltpu.VMEM((8, _LANES), jnp.float32) for _ in stats],
        ),
        compiler_params=pltpu.CompilerParams(
            dimension_semantics=("parallel", "arbitrary"),
            vmem_limit_bytes=32 * 1024 * 1024,
        ),
    )(yt2, yp2)

    # Tiny final reduction: sum over cores and lanes -> (8,) scalar stats.
    return jnp.sum(out, axis=(0, 2))


# ----------------------------------------------------------------------------
# Loss assembly from the scalar statistics (pure glue arithmetic).
# ----------------------------------------------------------------------------
def _mse(s):
    return s[_ROW["s_d2"]] / s[_ROW["cnt"]]


def _mae(s):
    return s[_ROW["s_ad"]] / s[_ROW["cnt"]]


def _rmse(s):
    return jnp.sqrt(s[_ROW["s_d2"]] / s[_ROW["cnt"]])


def _rmse_normalize(s):
    return jnp.sqrt(s[_ROW["s_d2"]] / s[_ROW["cnt"]]) / (s[_ROW["s_t"]] / s[_ROW["cnt"]])


def _nse_complement(s):
    # TODO(synk): the expanded ssd = s_t2 - 2*mp*s_t + cnt*mp^2 can suffer fp32
    # cancellation when |mean(y)| >> spread(y); a two-pass (or Chan-style
    # per-tile centered merge) would fix it at the cost of a second HBM pass.
    cnt, s_t, s_p = s[_ROW["cnt"]], s[_ROW["s_t"]], s[_ROW["s_p"]]
    s_d2, s_t2 = s[_ROW["s_d2"]], s[_ROW["s_t2"]]
    mean_p = s_p / cnt
    ssd = s_t2 - 2.0 * mean_p * s_t + cnt * mean_p * mean_p
    return s_d2 / ssd


_LOSS_FUNCTIONS = {
    "MSE": _mse,
    "RMSE": _rmse,
    "RMSE_normalize": _rmse_normalize,
    "MAE": _mae,
    "NSE_complement": _nse_complement,
}


# ----------------------------------------------------------------------------
# CustomLoss wrapper mirroring the PyTorch module semantics.
# ----------------------------------------------------------------------------
class CustomLoss:
    def __init__(self, loss_function: str):
        assemble = _LOSS_FUNCTIONS[loss_function]
        stats = _LOSS_STATS[loss_function]
        # Jitted, sync-free path: use this inside a jitted train step.
        self.loss = jax.jit(
            lambda yt, yp: assemble(_masked_stats_impl(yt, yp, stats)))

    def __call__(self, y_true, y_pred):
        loss = self.loss(y_true, y_pred)
        # Original module semantics: raise if the loss is NaN.  NOTE: this
        # forces a device->host sync; prefer calling `.loss(...)` directly in
        # the training step and checking for NaNs periodically.
        if bool(jnp.isnan(loss)):
            raise ValueError(
                "loss is nan, cannot train the model, check training data")
        return loss


# ----------------------------------------------------------------------------
# Pure-JAX reference for sanity checking.
# ----------------------------------------------------------------------------
def _ref_loss(name, y_true, y_pred):
    mask = ~jnp.isnan(y_true)
    yt = y_true[mask]
    yp = y_pred[mask]
    mse = jnp.mean((yt - yp) ** 2)
    if name == "MSE":
        return mse
    if name == "RMSE":
        return mse ** 0.5
    if name == "RMSE_normalize":
        return mse ** 0.5 / jnp.mean(yt)
    if name == "MAE":
        return jnp.mean(jnp.abs(yt - yp))
    if name == "NSE_complement":
        sse = jnp.sum((yt - yp) ** 2)
        ssd = jnp.sum((yt - jnp.mean(yp)) ** 2)
        return sse / ssd
    raise KeyError(name)


def _make_case(key, n, d, nan_frac=0.2):
    k1, k2, k3 = jax.random.split(key, 3)
    y_true = jax.random.normal(k1, (n, d), dtype=jnp.float32) + 2.0
    y_pred = y_true + 0.1 * jax.random.normal(k2, (n, d), dtype=jnp.float32)
    nan_mask = jax.random.uniform(k3, (n, d)) < nan_frac
    y_true = jnp.where(nan_mask, jnp.nan, y_true)
    return y_true, y_pred


if __name__ == "__main__":
    key = jax.random.PRNGKey(0)
    ka, kb, kc = jax.random.split(key, 3)

    cases = [
        _make_case(ka, 64, 32),   # total % 128 == 0 -> fully copy-free path
        _make_case(kb, 50, 7),    # misaligned total  -> minimal 128-pad path
        _make_case(kc, 257, 5),   # exercises partial / clamped row blocks
    ]

    ok = True
    for name in ["MSE", "RMSE", "RMSE_normalize", "MAE", "NSE_complement"]:
        loss_mod = CustomLoss(name)
        for y_true, y_pred in cases:
            out = jax.block_until_ready(loss_mod(y_true, y_pred))
            ref = _ref_loss(name, y_true, y_pred)
            if not bool(jnp.allclose(out, ref, rtol=2e-4, atol=1e-5)):
                ok = False
                print(f"MISMATCH {name} shape={y_true.shape}: "
                      f"kernel={out} ref={ref}")

    if ok:
        print("KERNEL_OK")
</pallas_src>

<mosaic_0001>
module attributes {stable_mosaic.version = 11 : i64} {
  func.func @kernel(%arg0: i32, %arg1: i32, %arg2: memref<16x128xf32, #tpu.memory_space<vmem>>, %arg3: memref<16x128xf32, #tpu.memory_space<vmem>>, %arg4: memref<1x8x128xf32, #tpu.memory_space<vmem>>, %arg5: memref<8x128xf32, #tpu.memory_space<vmem>>, %arg6: memref<8x128xf32, #tpu.memory_space<vmem>>) attributes {dimension_semantics = [#tpu.dimension_semantics<parallel>, #tpu.dimension_semantics<arbitrary>], iteration_bounds = array<i64: 1, 1>, scalar_prefetch = 0 : i64, scratch_operands = 2 : i64, tpu.core_type = #tpu.core_type<tc>, window_params = [{transform_indices = @transform_0, window_bounds = array<i64: 16, 128>}, {transform_indices = @transform_1, window_bounds = array<i64: 16, 128>}, {transform_indices = @transform_2, window_bounds = array<i64: 1, 8, 128>}]} {
    %c0_i32 = arith.constant 0 : i32
    %0 = arith.cmpi eq, %arg1, %c0_i32 : i32
    %1 = arith.extui %0 : i1 to i32
    %c0_i32_0 = arith.constant 0 : i32
    %2 = arith.cmpi ne, %1, %c0_i32_0 : i32
    scf.if %2 {
      %cst_18 = arith.constant 0.000000e+00 : f32
      %28 = vector.broadcast %cst_18 : f32 to vector<8x128xf32>
      %c0_19 = arith.constant 0 : index
      %c0_20 = arith.constant 0 : index
      %29 = vector.load %arg5[%c0_19, %c0_20] : memref<8x128xf32, #tpu.memory_space<vmem>>, vector<8x128xf32>
      tpu.vector_store %arg5[%c0_19, %c0_20], %28 {strides = array<i32>} : memref<8x128xf32, #tpu.memory_space<vmem>>, vector<8x128xf32>,
      %cst_21 = arith.constant 0.000000e+00 : f32
      %30 = vector.broadcast %cst_21 : f32 to vector<8x128xf32>
      %c0_22 = arith.constant 0 : index
      %c0_23 = arith.constant 0 : index
      %31 = vector.load %arg6[%c0_22, %c0_23] : memref<8x128xf32, #tpu.memory_space<vmem>>, vector<8x128xf32>
      tpu.vector_store %arg6[%c0_22, %c0_23], %30 {strides = array<i32>} : memref<8x128xf32, #tpu.memory_space<vmem>>, vector<8x128xf32>,
    } else {
    }
    %c0 = arith.constant 0 : index
    %c0_1 = arith.constant 0 : index
    %3 = vector.load %arg2[%c0, %c0_1] : memref<16x128xf32, #tpu.memory_space<vmem>>, vector<16x128xf32>
    %c0_2 = arith.constant 0 : index
    %c0_3 = arith.constant 0 : index
    %4 = vector.load %arg3[%c0_2, %c0_3] : memref<16x128xf32, #tpu.memory_space<vmem>>, vector<16x128xf32>
    %5 = arith.cmpf one, %3, %3 : vector<16x128xf32>
    %cst = arith.constant dense<true> : vector<16x128xi1>
    %6 = arith.xori %5, %cst : vector<16x128xi1>
    %cst_4 = arith.constant 0.000000e+00 : f32
    %7 = vector.broadcast %cst_4 : f32 to vector<16x128xf32>
    %8 = arith.select %6, %3, %7 : vector<16x128xi1>, vector<16x128xf32>
    %cst_5 = arith.constant 0.000000e+00 : f32
    %9 = vector.broadcast %cst_5 : f32 to vector<16x128xf32>
    %10 = arith.select %6, %4, %9 : vector<16x128xi1>, vector<16x128xf32>
    %11 = arith.subf %8, %10 : vector<16x128xf32>
    %c0_6 = arith.constant 0 : index
    %c0_7 = arith.constant 0 : index
    %12 = vector.load %arg5[%c0_6, %c0_7] : memref<8x128xf32, #tpu.memory_space<vmem>>, vector<8x128xf32>
    %13 = arith.extui %6 : vector<16x128xi1> to vector<16x128xi32>
    %14 = arith.sitofp %13 : vector<16x128xi32> to vector<16x128xf32>
    %15 = vector.shape_cast %14 : vector<16x128xf32> to vector<2x8x128xf32>
    %cst_8 = arith.constant dense<0.000000e+00> : vector<8x128xf32>
    %16 = vector.multi_reduction <add>, %15, %cst_8 [0] : vector<2x8x128xf32> to vector<8x128xf32>
    %17 = arith.addf %12, %16 : vector<8x128xf32>
    %c0_9 = arith.constant 0 : index
    %c0_10 = arith.constant 0 : index
    %18 = vector.load %arg5[%c0_9, %c0_10] : memref<8x128xf32, #tpu.memory_space<vmem>>, vector<8x128xf32>
    tpu.vector_store %arg5[%c0_9, %c0_10], %17 {strides = array<i32>} : memref<8x128xf32, #tpu.memory_space<vmem>>, vector<8x128xf32>,
    %c0_11 = arith.constant 0 : index
    %c0_12 = arith.constant 0 : index
    %19 = vector.load %arg6[%c0_11, %c0_12] : memref<8x128xf32, #tpu.memory_space<vmem>>, vector<8x128xf32>
    %20 = arith.mulf %11, %11 : vector<16x128xf32>
    %21 = vector.shape_cast %20 : vector<16x128xf32> to vector<2x8x128xf32>
    %cst_13 = arith.constant dense<0.000000e+00> : vector<8x128xf32>
    %22 = vector.multi_reduction <add>, %21, %cst_13 [0] : vector<2x8x128xf32> to vector<8x128xf32>
    %23 = arith.addf %19, %22 : vector<8x128xf32>
    %c0_14 = arith.constant 0 : index
    %c0_15 = arith.constant 0 : index
    %24 = vector.load %arg6[%c0_14, %c0_15] : memref<8x128xf32, #tpu.memory_space<vmem>>, vector<8x128xf32>
    tpu.vector_store %arg6[%c0_14, %c0_15], %23 {strides = array<i32>} : memref<8x128xf32, #tpu.memory_space<vmem>>, vector<8x128xf32>,
    %c0_i32_16 = arith.constant 0 : i32
    %25 = arith.cmpi eq, %arg1, %c0_i32_16 : i32
    %26 = arith.extui %25 : i1 to i32
    %c0_i32_17 = arith.constant 0 : i32
    %27 = arith.cmpi ne, %26, %c0_i32_17 : i32
    scf.if %27 {
      %c0_18 = arith.constant 0 : index
      %c0_19 = arith.constant 0 : index
      %28 = vector.load %arg5[%c0_18, %c0_19] : memref<8x128xf32, #tpu.memory_space<vmem>>, vector<8x128xf32>
      %cst_20 = arith.constant dense<0.000000e+00> : vector<128xf32>
      %29 = vector.multi_reduction <add>, %28, %cst_20 [0] : vector<8x128xf32> to vector<128xf32>
      %30 = vector.shape_cast %29 : vector<128xf32> to vector<1x128xf32>
      %cst_21 = arith.constant 0.000000e+00 : f32
      %31 = vector.broadcast %cst_21 : f32 to vector<1x128xf32>
      %cst_22 = arith.constant 0.000000e+00 : f32
      %32 = vector.broadcast %cst_22 : f32 to vector<1x128xf32>
      %c0_23 = arith.constant 0 : index
      %c0_24 = arith.constant 0 : index
      %33 = vector.load %arg6[%c0_23, %c0_24] : memref<8x128xf32, #tpu.memory_space<vmem>>, vector<8x128xf32>
      %cst_25 = arith.constant dense<0.000000e+00> : vector<128xf32>
      %34 = vector.multi_reduction <add>, %33, %cst_25 [0] : vector<8x128xf32> to vector<128xf32>
      %35 = vector.shape_cast %34 : vector<128xf32> to vector<1x128xf32>
      %cst_26 = arith.constant 0.000000e+00 : f32
      %36 = vector.broadcast %cst_26 : f32 to vector<1x128xf32>
      %cst_27 = arith.constant 0.000000e+00 : f32
      %37 = vector.broadcast %cst_27 : f32 to vector<1x128xf32>
      %cst_28 = arith.constant 0.000000e+00 : f32
      %38 = vector.broadcast %cst_28 : f32 to vector<2x128xf32>
      %39 = tpu.concatenate %30, %31, %32, %35, %36, %37, %38 in 0 : vector<1x128xf32>, vector<1x128xf32>, vector<1x128xf32>, vector<1x128xf32>, vector<1x128xf32>, vector<1x128xf32>, vector<2x128xf32> -> vector<8x128xf32>
      %40 = vector.shape_cast %39 : vector<8x128xf32> to vector<1x8x128xf32>
      %c0_29 = arith.constant 0 : index
      %c0_30 = arith.constant 0 : index
      %c0_31 = arith.constant 0 : index
      %41 = vector.load %arg4[%c0_29, %c0_30, %c0_31] : memref<1x8x128xf32, #tpu.memory_space<vmem>>, vector<1x8x128xf32>
      tpu.vector_store %arg4[%c0_29, %c0_30, %c0_31], %40 {strides = array<i32>} : memref<1x8x128xf32, #tpu.memory_space<vmem>>, vector<1x8x128xf32>,
    } else {
    }
    return
  }
  func.func @transform_0(%arg0: i32, %arg1: i32) -> (i32, i32) {
    %c1_i32 = arith.constant 1 : i32
    %0 = arith.muli %arg0, %c1_i32 : i32
    %1 = arith.addi %0, %arg1 : i32
    %c0_i32 = arith.constant 0 : i32
    %2 = arith.minsi %1, %c0_i32 : i32
    %c0_i32_0 = arith.constant 0 : i32
    %c0_i32_1 = arith.constant 0 : i32
    return %2, %c0_i32_0 : i32, i32
  }
  func.func @transform_1(%arg0: i32, %arg1: i32) -> (i32, i32) {
    %c1_i32 = arith.constant 1 : i32
    %0 = arith.muli %arg0, %c1_i32 : i32
    %1 = arith.addi %0, %arg1 : i32
    %c0_i32 = arith.constant 0 : i32
    %2 = arith.minsi %1, %c0_i32 : i32
    %c0_i32_0 = arith.constant 0 : i32
    %c0_i32_1 = arith.constant 0 : i32
    return %2, %c0_i32_0 : i32, i32
  }
  func.func @transform_2(%arg0: i32, %arg1: i32) -> (i32, i32, i32) {
    %c0_i32 = arith.constant 0 : i32
    %c0_i32_0 = arith.constant 0 : i32
    %c0_i32_1 = arith.constant 0 : i32
    return %arg0, %c0_i32, %c0_i32_0 : i32, i32, i32
  }
}

</mosaic_0001>

<bundles_post_ra>
// kernel: _lambda_.1
= control target key start
LH: loop header
LB: loop body
LE: loop exit
PB: predicated region body
PF: predicated region fallthrough
CT: control target
= control target key end

     0   :  { %vm159_vm2 = vmmov 1   ;;  %v160_v6 = vmov 0.0   ;;  %vm126_vm5 = vcmask 1040384   ;;  %vm128_vm6 = vcmask 1041408   ;;  %s191_s0 = inlined_call_operand.vmem [shape: f32[16,128], index: 0, kind: input, shape index: {}]   ;;  %s192_s1 = inlined_call_operand.vmem [shape: f32[16,128], index: 1, kind: input, shape index: {}]   ;;  %s193_s2 = inlined_call_operand.vmem [shape: f32[1,8,128], index: 2, kind: output, shape index: {}]  }
   0x1   :  { %v81_v0 = vld [vmem:[%s191_s0] sm:$0xff]  ;;  %v82_v1 = vld [vmem:[%s191_s0 + $0x8] sm:$0xff]  ;;  %vm130_vm7 = vcmask 1042432   ;;  %vm132_vm8 = vcmask 1043456   ;;  %vm134_vm9 = vcmask 1044480   ;;  %vm136_vm10 = vcmask 1045504  }
   0x2   :  { %v83_v2 = vld [vmem:[%s192_s1] sm:$0xff]  ;;  %v84_v3 = vld [vmem:[%s192_s1 + $0x8] sm:$0xff]  ;;  %vm85_vm0 = vcmp.ne.f32.partialorder %v81_v0, %v81_v0  ;;  %vm86_vm1 = vcmp.ne.f32.partialorder %v82_v1, %v82_v1 }
   0x3   :  { %vm87_vm3 = vmxor %vm85_vm0, %vm159_vm2 }
   0x4   :  { %vm88_vm4 = vmxor %vm86_vm1, %vm159_vm2  ;;  %v89_v4 = vsel %vm87_vm3, %v81_v0, 0.0  ;;  %v91_v5 = vsel %vm87_vm3, %v83_v2, 0.0  ;;  %v155_v7 = vsel %vm87_vm3, 1.0, %v160_v6 }
   0x5   :  { %v90_v8 = vsel %vm88_vm4, %v82_v1, 0.0  ;;  %v92_v9 = vsel %vm88_vm4, %v84_v3, 0.0  ;;  %v93_v10 = vsub.f32 %v89_v4, %v91_v5  ;;  %v156_v11 = vsel %vm88_vm4, 1.0, %v160_v6 }
   0x6   :  { %v94_v12 = vsub.f32 %v90_v8, %v92_v9  ;;  %v100_v13 = vadd.f32 %v156_v11, %v155_v7 }
   0x7   :  { %v104_v14 = vmul.f32 %v93_v10, %v93_v10 }
   0x8   :  { %v105_v15 = vmul.f32 %v94_v12, %v94_v12  ;;  %v113_v16 = vrot.slane %v100_v13, 4 }
   0xa   :  { %v106_v17 = vadd.f32 %v105_v15, %v104_v14  ;;  %v114_v18 = vadd.f32 %v113_v16, %v100_v13 }
   0xc   :  { %v115_v19 = vrot.slane %v114_v18, 2  ;;  %v120_v20 = vrot.slane %v106_v17, 4 }
   0xe   :  { %v116_v21 = vadd.f32 %v115_v19, %v114_v18  ;;  %v121_v22 = vadd.f32 %v120_v20, %v106_v17 }
  0x10   :  { %v117_v23 = vrot.slane %v116_v21, 1  ;;  %v122_v24 = vrot.slane %v121_v22, 2 }
  0x12   :  { %v118_v25 = vadd.f32 %v117_v23, %v116_v21  ;;  %v123_v26 = vadd.f32 %v122_v24, %v121_v22 }
  0x14   :  { %v124_v27 = vrot.slane %v123_v26, 1  ;;  %v127_v28 = vsel %vm126_vm5, %v118_v25, 0.0 }
  0x15   :  { %v129_v29 = vsel %vm128_vm6, %v127_v28, 0.0 }
  0x16   :  { %v125_v30 = vadd.f32 %v124_v27, %v123_v26 }
  0x18   :  { %v131_v31 = vsel %vm130_vm7, %v129_v29, %v125_v30 }
  0x19   :  { %v133_v32 = vsel %vm132_vm8, %v131_v31, 0.0 }
  0x1a   :  { %v135_v33 = vsel %vm134_vm9, %v133_v32, 0.0 }
  0x1b   :  { %v137_v34 = vsel %vm136_vm10, %v135_v33, 0.0 }
  0x1c   :  { %138 = vst [vmem:[%s193_s2] sm:$0xff] %v137_v34 }

</bundles_post_ra>
